<compile_context>
chip_gen: v5e
topology: v5e:2x2
jax: 0.10.0
libtpu: 0.0.40
codegen_flags: <defaults>
</compile_context>

<pallas_src>
import math
from functools import partial

import jax
import jax.numpy as jnp
from jax.experimental import pallas as pl
from jax.experimental.pallas import tpu as pltpu

_INV_SQRT2 = 1.0 / math.sqrt(2.0)
_SQRT_2_OVER_PI = math.sqrt(2.0 / math.pi)


def _mlp_kernel(x_ref, w1_ref, b1_ref, w2_ref, b2_ref, o_ref, acc_ref, *,
                approx_gelu: bool):
    h_idx = pl.program_id(1)

    @pl.when(h_idx == 0)
    def _():
        acc_ref[...] = jnp.zeros_like(acc_ref)

    # fc1 partial product for this hidden slab: [tm, din] @ [din, th] (MXU, f32 acc)
    h = jnp.dot(x_ref[...], w1_ref[...], preferred_element_type=jnp.float32)
    h = h + b1_ref[...]  # f32 bias, broadcast over rows

    if approx_gelu:
        # tanh-approx GELU: transcendental runs on the otherwise-idle EUP slot.
        h = 0.5 * h * (1.0 + jnp.tanh(_SQRT_2_OVER_PI * (h + 0.044715 * h * h * h)))
    else:
        # exact GELU (PyTorch nn.GELU default): 0.5 * x * (1 + erf(x / sqrt(2)))
        h = 0.5 * h * (1.0 + jax.lax.erf(h * _INV_SQRT2))

    # fc2 partial product, accumulated in f32 VMEM across hidden slabs.
    acc_ref[...] += jnp.dot(h.astype(w2_ref.dtype), w2_ref[...],
                            preferred_element_type=jnp.float32)

    @pl.when(h_idx == pl.num_programs(1) - 1)
    def _():
        # dropout with p=0.0 is identity (eval semantics)
        o_ref[...] = (acc_ref[...] + b2_ref[...]).astype(o_ref.dtype)


def _round_up(v, m):
    return ((v + m - 1) // m) * m


def _vmem_capacity_bytes():
    try:
        return int(pltpu.get_tpu_info().vmem_capacity_bytes)
    except Exception:
        return 64 << 20  # conservative (v7x-class) fallback


def _plan_tiles(m, in_features, hidden_features, out_features,
                cbytes, obytes, block_m, budget_bytes):
    """Pick (row tile, hidden tile) so the per-step VMEM footprint fits budget."""
    din_p = _round_up(in_features, 128)
    dout_p = _round_up(out_features, 128)
    h_full = _round_up(hidden_features, 128)

    # Row tile: large enough to amortize per-step overhead, but force >= 2 grid
    # steps when possible so v7x's two TensorCores both get work.
    tm = max(8, min(block_m, _round_up(m, 8)))
    if m > 8 and pl.cdiv(m, tm) < 2:
        tm = max(8, _round_up(pl.cdiv(m, 2), 8))

    def footprint(tm_, th_):
        n_h_ = pl.cdiv(h_full, th_)
        wbuf = 1 if n_h_ == 1 else 2          # constant-index weights: single buffer
        return (wbuf * (din_p + dout_p) * th_ * cbytes   # w1 / w2 slabs
                + wbuf * th_ * 4 + dout_p * 4            # b1 slabs + b2 (f32)
                + 2 * tm_ * din_p * cbytes               # x tiles (double-buffered)
                + 2 * tm_ * dout_p * obytes              # out tiles (double-buffered)
                + tm_ * dout_p * 4                       # f32 accumulator scratch
                + 2 * tm_ * th_ * 4)                     # f32 fc1/GELU intermediates

    th = h_full
    while footprint(tm, th) > budget_bytes:
        if th > 128:
            th = max(128, _round_up(th // 2, 128))
        elif tm > 128:
            tm = max(128, _round_up(tm // 2, 8))
        elif tm > 8:
            tm = max(8, _round_up(tm // 2, 8))
        else:
            break  # best effort on tiny tiles

    h_p = _round_up(hidden_features, th)
    n_h = h_p // th
    return tm, th, din_p, h_p, dout_p, n_h, footprint(tm, th)


def mlp_pallas(x, w1, b1, w2, b2, *, block_m=512, use_bf16_matmul=True,
               approx_gelu=False):
    """VideoLaVIT Mlp forward.

    x: [..., in_features].  w1: [in, hidden], b1: [hidden], w2: [hidden, out], b2: [out].
    """
    in_features, hidden_features = w1.shape
    out_features = w2.shape[1]
    assert x.shape[-1] == in_features
    assert w2.shape == (hidden_features, out_features)
    assert b1.shape == (hidden_features,)
    assert b2.shape == (out_features,)

    lead_shape = x.shape[:-1]
    m = 1
    for d in lead_shape:
        m *= d
    if m == 0:  # empty leading dims: nothing to do
        return jnp.zeros((*lead_shape, out_features), dtype=x.dtype)

    compute_dtype = jnp.bfloat16 if use_bf16_matmul else x.dtype
    cbytes = jnp.dtype(compute_dtype).itemsize
    obytes = jnp.dtype(x.dtype).itemsize

    vmem_cap = _vmem_capacity_bytes()
    tile_budget = int(vmem_cap * 0.70)   # leave headroom for compiler scratch
    vmem_limit = int(vmem_cap * 0.85)

    tm, th, din_p, h_p, dout_p, n_h, _est_vmem = _plan_tiles(
        m, in_features, hidden_features, out_features,
        cbytes, obytes, block_m, tile_budget)

    # ---- activations: cast / pad feature dim only when actually required ----
    x2d = x.reshape(m, in_features)
    x_in = x2d if x2d.dtype == compute_dtype else x2d.astype(compute_dtype)
    if din_p != in_features:
        x_in = jnp.pad(x_in, ((0, 0), (0, din_p - in_features)))
    # Rows are NOT padded: grid uses cdiv(m, tm); Pallas masks the ragged tile.

    # ---- weights / biases: one-time cheap pad to lane-dense 128 multiples ----
    w1p = jnp.pad(w1.astype(compute_dtype),
                  ((0, din_p - in_features), (0, h_p - hidden_features)))
    w2p = jnp.pad(w2.astype(compute_dtype),
                  ((0, h_p - hidden_features), (0, dout_p - out_features)))
    # Biases stay f32 (bias add + GELU run in f32 on VPU/EUP).
    b1p = jnp.pad(b1.astype(jnp.float32), (0, h_p - hidden_features)).reshape(1, h_p)
    b2p = jnp.pad(b2.astype(jnp.float32), (0, dout_p - out_features)).reshape(1, dout_p)

    n_rows = pl.cdiv(m, tm)
    grid = (n_rows, n_h)

    # Constant-index operands waste their second pipeline buffer -> single-buffer.
    w_buffers = 1 if n_h == 1 else 2

    def spec(shape, index_map, buffers=None):
        if buffers is None:
            return pl.BlockSpec(shape, index_map)
        try:
            return pl.BlockSpec(shape, index_map, pipeline_mode=pl.Buffered(buffers))
        except (TypeError, AttributeError):  # older JAX: fall back to default
            return pl.BlockSpec(shape, index_map)

    m_work = n_rows * tm
    weight_bytes = (din_p * h_p + h_p * dout_p) * cbytes
    weight_passes = 1 if n_h == 1 else n_rows  # hidden-split re-streams weights per row tile
    cost = pl.CostEstimate(
        flops=2 * m_work * din_p * h_p + 2 * m_work * h_p * dout_p,
        transcendentals=m_work * h_p,
        bytes_accessed=(m_work * din_p * cbytes
                        + weight_passes * weight_bytes
                        + (h_p + dout_p) * 4
                        + m_work * dout_p * obytes),
    )

    out2d = pl.pallas_call(
        partial(_mlp_kernel, approx_gelu=approx_gelu),
        out_shape=jax.ShapeDtypeStruct((m, dout_p), x.dtype),
        grid_spec=pltpu.PrefetchScalarGridSpec(
            num_scalar_prefetch=0,
            grid=grid,
            in_specs=[
                spec((tm, din_p), lambda i, h: (i, 0)),              # x row tile (pipelined)
                spec((din_p, th), lambda i, h: (0, h), w_buffers),   # w1 slab
                spec((1, th), lambda i, h: (0, h), w_buffers),       # b1 slab
                spec((th, dout_p), lambda i, h: (h, 0), w_buffers),  # w2 slab
                spec((1, dout_p), lambda i, h: (0, 0), 1),           # b2 (resident)
            ],
            out_specs=pl.BlockSpec((tm, dout_p), lambda i, h: (i, 0)),
            scratch_shapes=[pltpu.VMEM((tm, dout_p), jnp.float32)],
        ),
        compiler_params=pltpu.CompilerParams(
            dimension_semantics=("parallel", "arbitrary"),
            vmem_limit_bytes=vmem_limit,
        ),
        cost_estimate=cost,
    )(x_in, w1p, b1p, w2p, b2p)

    if dout_p != out_features:
        out2d = out2d[:, :out_features]
    return out2d.reshape(*lead_shape, out_features)


def reference_mlp(x, w1, b1, w2, b2):
    h = jnp.dot(x, w1) + b1
    h = 0.5 * h * (1.0 + jax.lax.erf(h / jnp.sqrt(2.0)))
    return jnp.dot(h, w2) + b2


if __name__ == "__main__":
    # Module config (synthetic, deterministic init): in=32, hidden=64, out=32
    batch, seq = 2, 8
    in_features, hidden_features = 32, 64
    out_features = in_features

    key = jax.random.PRNGKey(0)
    kx, k1, k2, k3, k4 = jax.random.split(key, 5)

    x = jax.random.normal(kx, (batch, seq, in_features), dtype=jnp.float32)

    # nn.Linear-style uniform init (deterministic), stored as [in, out]
    bound1 = 1.0 / math.sqrt(in_features)
    w1 = jax.random.uniform(k1, (in_features, hidden_features), jnp.float32,
                            -bound1, bound1)
    b1 = jax.random.uniform(k2, (hidden_features,), jnp.float32, -bound1, bound1)

    bound2 = 1.0 / math.sqrt(hidden_features)
    w2 = jax.random.uniform(k3, (hidden_features, out_features), jnp.float32,
                            -bound2, bound2)
    b2 = jax.random.uniform(k4, (out_features,), jnp.float32, -bound2, bound2)

    ref = reference_mlp(x, w1, b1, w2, b2)

    # Default path: bf16 MXU operands, f32 accumulation / bias / exact-erf GELU.
    out = jax.block_until_ready(mlp_pallas(x, w1, b1, w2, b2))
    assert out.shape == (batch, seq, out_features)
    assert jnp.allclose(out, ref, atol=5e-2, rtol=5e-2)

    # Strict f32 opt-in path (matches PyTorch exact-erf GELU to tight tolerance).
    out_f32 = jax.block_until_ready(
        mlp_pallas(x, w1, b1, w2, b2, use_bf16_matmul=False))
    assert out_f32.shape == (batch, seq, out_features)
    assert jnp.allclose(out_f32, ref, atol=1e-5, rtol=1e-5)

    # tanh-approx GELU opt-in (EUP offload when the erf chain is VALU-bound on v6e/v7x).
    out_tanh = jax.block_until_ready(
        mlp_pallas(x, w1, b1, w2, b2, approx_gelu=True))
    assert jnp.allclose(out_tanh, ref, atol=5e-2, rtol=5e-2)

    print("KERNEL_OK")
</pallas_src>

<mosaic_0001>
module attributes {stable_mosaic.version = 11 : i64} {
  func.func @_mlp_kernel(%arg0: i32, %arg1: i32, %arg2: memref<8x128xbf16, #tpu.memory_space<vmem>>, %arg3: memref<128x128xbf16, #tpu.memory_space<vmem>>, %arg4: memref<1x128xf32, #tpu.memory_space<vmem>>, %arg5: memref<128x128xbf16, #tpu.memory_space<vmem>>, %arg6: memref<1x128xf32, #tpu.memory_space<vmem>>, %arg7: memref<8x128xf32, #tpu.memory_space<vmem>>, %arg8: memref<8x128xf32, #tpu.memory_space<vmem>>) attributes {dimension_semantics = [#tpu.dimension_semantics<parallel>, #tpu.dimension_semantics<arbitrary>], iteration_bounds = array<i64: 2, 1>, scalar_prefetch = 0 : i64, scratch_operands = 1 : i64, tpu.core_type = #tpu.core_type<tc>, window_params = [{transform_indices = @transform_0, window_bounds = array<i64: 8, 128>}, {pipeline_mode = #tpu.pipeline_mode<synchronous>, transform_indices = @transform_1, window_bounds = array<i64: 128, 128>}, {pipeline_mode = #tpu.pipeline_mode<synchronous>, transform_indices = @transform_2, window_bounds = array<i64: 1, 128>}, {pipeline_mode = #tpu.pipeline_mode<synchronous>, transform_indices = @transform_3, window_bounds = array<i64: 128, 128>}, {pipeline_mode = #tpu.pipeline_mode<synchronous>, transform_indices = @transform_4, window_bounds = array<i64: 1, 128>}, {transform_indices = @transform_5, window_bounds = array<i64: 8, 128>}]} {
    %c0_i32 = arith.constant 0 : i32
    %0 = arith.cmpi eq, %arg1, %c0_i32 : i32
    %1 = arith.extui %0 : i1 to i32
    %c0_i32_0 = arith.constant 0 : i32
    %2 = arith.cmpi ne, %1, %c0_i32_0 : i32
    scf.if %2 {
      %cst_18 = arith.constant 0.000000e+00 : f32
      %26 = vector.broadcast %cst_18 : f32 to vector<8x128xf32>
      %c0_19 = arith.constant 0 : index
      %c0_20 = arith.constant 0 : index
      %27 = vector.load %arg8[%c0_19, %c0_20] : memref<8x128xf32, #tpu.memory_space<vmem>>, vector<8x128xf32>
      tpu.vector_store %arg8[%c0_19, %c0_20], %26 {strides = array<i32>} : memref<8x128xf32, #tpu.memory_space<vmem>>, vector<8x128xf32>,
    } else {
    }
    %c0 = arith.constant 0 : index
    %c0_1 = arith.constant 0 : index
    %3 = vector.load %arg2[%c0, %c0_1] : memref<8x128xbf16, #tpu.memory_space<vmem>>, vector<8x128xbf16>
    %c0_2 = arith.constant 0 : index
    %c0_3 = arith.constant 0 : index
    %4 = vector.load %arg3[%c0_2, %c0_3] : memref<128x128xbf16, #tpu.memory_space<vmem>>, vector<128x128xbf16>
    %cst = arith.constant dense<0.000000e+00> : vector<8x128xf32>
    %5 = tpu.matmul %3, %4, %cst {dimension_numbers = #tpu.dot_dimension_numbers<[1], [0], [0], [1], [0, 0, 1, 1], [], []>} : vector<8x128xbf16>, vector<128x128xbf16>, vector<8x128xf32> -> vector<8x128xf32>
    %c0_4 = arith.constant 0 : index
    %c0_5 = arith.constant 0 : index
    %6 = vector.load %arg4[%c0_4, %c0_5] : memref<1x128xf32, #tpu.memory_space<vmem>>, vector<1x128xf32>
    %7 = vector.broadcast %6 : vector<1x128xf32> to vector<8x128xf32>
    %8 = arith.addf %5, %7 : vector<8x128xf32>
    %cst_6 = arith.constant 5.000000e-01 : f32
    %9 = vector.broadcast %cst_6 : f32 to vector<8x128xf32>
    %10 = arith.mulf %9, %8 : vector<8x128xf32>
    %cst_7 = arith.constant 0.707106769 : f32
    %11 = vector.broadcast %cst_7 : f32 to vector<8x128xf32>
    %12 = arith.mulf %8, %11 : vector<8x128xf32>
    %13 = math.erf %12 : vector<8x128xf32>
    %cst_8 = arith.constant 1.000000e+00 : f32
    %14 = vector.broadcast %cst_8 : f32 to vector<8x128xf32>
    %15 = arith.addf %14, %13 : vector<8x128xf32>
    %16 = arith.mulf %10, %15 : vector<8x128xf32>
    %c0_9 = arith.constant 0 : index
    %c0_10 = arith.constant 0 : index
    %17 = vector.load %arg8[%c0_9, %c0_10] : memref<8x128xf32, #tpu.memory_space<vmem>>, vector<8x128xf32>
    %18 = arith.truncf %16 : vector<8x128xf32> to vector<8x128xbf16>
    %c0_11 = arith.constant 0 : index
    %c0_12 = arith.constant 0 : index
    %19 = vector.load %arg5[%c0_11, %c0_12] : memref<128x128xbf16, #tpu.memory_space<vmem>>, vector<128x128xbf16>
    %cst_13 = arith.constant dense<0.000000e+00> : vector<8x128xf32>
    %20 = tpu.matmul %18, %19, %cst_13 {dimension_numbers = #tpu.dot_dimension_numbers<[1], [0], [0], [1], [0, 0, 1, 1], [], []>} : vector<8x128xbf16>, vector<128x128xbf16>, vector<8x128xf32> -> vector<8x128xf32>
    %21 = arith.addf %17, %20 : vector<8x128xf32>
    %c0_14 = arith.constant 0 : index
    %c0_15 = arith.constant 0 : index
    %22 = vector.load %arg8[%c0_14, %c0_15] : memref<8x128xf32, #tpu.memory_space<vmem>>, vector<8x128xf32>
    tpu.vector_store %arg8[%c0_14, %c0_15], %21 {strides = array<i32>} : memref<8x128xf32, #tpu.memory_space<vmem>>, vector<8x128xf32>,
    %c0_i32_16 = arith.constant 0 : i32
    %23 = arith.cmpi eq, %arg1, %c0_i32_16 : i32
    %24 = arith.extui %23 : i1 to i32
    %c0_i32_17 = arith.constant 0 : i32
    %25 = arith.cmpi ne, %24, %c0_i32_17 : i32
    scf.if %25 {
      %c0_18 = arith.constant 0 : index
      %c0_19 = arith.constant 0 : index
      %26 = vector.load %arg8[%c0_18, %c0_19] : memref<8x128xf32, #tpu.memory_space<vmem>>, vector<8x128xf32>
      %c0_20 = arith.constant 0 : index
      %c0_21 = arith.constant 0 : index
      %27 = vector.load %arg6[%c0_20, %c0_21] : memref<1x128xf32, #tpu.memory_space<vmem>>, vector<1x128xf32>
      %28 = vector.broadcast %27 : vector<1x128xf32> to vector<8x128xf32>
      %29 = arith.addf %26, %28 : vector<8x128xf32>
      %c0_22 = arith.constant 0 : index
      %c0_23 = arith.constant 0 : index
      %30 = vector.load %arg7[%c0_22, %c0_23] : memref<8x128xf32, #tpu.memory_space<vmem>>, vector<8x128xf32>
      tpu.vector_store %arg7[%c0_22, %c0_23], %29 {strides = array<i32>} : memref<8x128xf32, #tpu.memory_space<vmem>>, vector<8x128xf32>,
    } else {
    }
    return
  }
  func.func @transform_0(%arg0: i32, %arg1: i32) -> (i32, i32) {
    %c0_i32 = arith.constant 0 : i32
    %c0_i32_0 = arith.constant 0 : i32
    return %arg0, %c0_i32 : i32, i32
  }
  func.func @transform_1(%arg0: i32, %arg1: i32) -> (i32, i32) {
    %c0_i32 = arith.constant 0 : i32
    %c0_i32_0 = arith.constant 0 : i32
    return %c0_i32, %arg1 : i32, i32
  }
  func.func @transform_2(%arg0: i32, %arg1: i32) -> (i32, i32) {
    %c0_i32 = arith.constant 0 : i32
    %c0_i32_0 = arith.constant 0 : i32
    return %c0_i32, %arg1 : i32, i32
  }
  func.func @transform_3(%arg0: i32, %arg1: i32) -> (i32, i32) {
    %c0_i32 = arith.constant 0 : i32
    %c0_i32_0 = arith.constant 0 : i32
    return %arg1, %c0_i32 : i32, i32
  }
  func.func @transform_4(%arg0: i32, %arg1: i32) -> (i32, i32) {
    %c0_i32 = arith.constant 0 : i32
    %c0_i32_0 = arith.constant 0 : i32
    %c0_i32_1 = arith.constant 0 : i32
    return %c0_i32, %c0_i32_0 : i32, i32
  }
  func.func @transform_5(%arg0: i32, %arg1: i32) -> (i32, i32) {
    %c0_i32 = arith.constant 0 : i32
    %c0_i32_0 = arith.constant 0 : i32
    return %arg0, %c0_i32 : i32, i32
  }
}

</mosaic_0001>

<bundles_post_ra>
// kernel: tpu_custom_call.1
= control target key start
LH: loop header
LB: loop body
LE: loop exit
PB: predicated region body
PF: predicated region fallthrough
CT: control target
= control target key end

     0   :  { %10 = vsyncpa [#allocation4], 0  ;;  %s1219_s0 = inlined_call_operand.hbm [shape: bf16[16,128], index: 0, kind: input, shape index: {}]   ;;  %s1220_s1 = inlined_call_operand.hbm [shape: bf16[128,128], index: 1, kind: input, shape index: {}]   ;;  %s1221_s2 = inlined_call_operand.vmem [shape: f32[1,128], index: 2, kind: input, shape index: {}]   ;;  %s1222_s3 = inlined_call_operand.hbm [shape: bf16[128,128], index: 3, kind: input, shape index: {}]   ;;  %s1223_s4 = inlined_call_operand.vmem [shape: f32[1,128], index: 4, kind: input, shape index: {}]   ;;  %s1224_s5 = inlined_call_operand.hbm [shape: f32[16,128], index: 5, kind: output, shape index: {}]  }
   0x1   :  { %12 = vsyncpa [#allocation4 + $0x1], 0 }
   0x2   :  { %13 = vsyncpa [#allocation7], 0 }
   0x3   :  { %14 = vsyncpa [#allocation5], 0 }
   0x4   :  { %16 = vsyncpa [#allocation5 + $0x1], 0  ;;  %s1068_s18 = smov 0   ;;  %s1070_s19 = smov 0  }
   0x5   :  { %s1072_s20 = smov 0   ;;  %s1074_s21 = smov 0  }
   0x6   :  { %s1076_s22 = smov 0   ;;  %s1078_s23 = smov 0  }
   0x7 LB: > { %s668_s24 = sadd.s32 4294967295, %s1032_s23   ;;  %p670_p0 = scmp.ge.s32.totalorder %s1032_s23, 1  ;;  %s1032_s23 = sphi %s1078_s23, %s22_s23   ;;  %s1028_s22 = sphi %s1076_s22, %s1234_s22   ;;  %s1024_s21 = sphi %s1074_s21, %s1233_s21   ;;  %s1020_s20 = sphi %s1072_s20, %s1232_s20   ;;  %s1016_s19 = sphi %s1070_s19, %s1231_s19   ;;  %s1012_s18 = sphi %s1068_s18, %s1230_s18  }
   0x8   : > { %p1102_p1 = scmp.eq.s32.totalorder %s668_s24, 0  ;;  %p190_p2 = scmp.lt.s32.totalorder %s1032_s23, 3 }
   0x9   : > { %s203_s28 = sshll.u32 %s1220_s1, 4  ;;  %s1034_s30 = smov [#allocation6]   ;;  %s204_s28 = int_to_ptr.hbm [resolvable:$true] %s203_s28 }
   0xa   : > { %p1110_p3 = pnand %p670_p0, %p190_p2  ;;  %s205_s6 = sshll.u32 %s1034_s30, 4  ;;  %s206_s6 = int_to_ptr.vmem [resolvable:$true] %s205_s6 }
   0xb   : > { %p674_p6 = scmp.ge.s32.totalorder %s1032_s23, 2  ;;  %s226_s9 = sshll.u32 %s1222_s3, 4  ;;  %s227_s9 = int_to_ptr.hbm [resolvable:$true] %s226_s9 }
   0xc   : > { %p779_p4 = pneg %p1110_p3  ;;  %s1035_s10 = smov 64  }
   0xd   : > { %s1036_s11 = smov 4   ;;  %s1037_s12 = smov [#allocation8]  }
   0xe   : > { %p780_p5 = pnand %p779_p4, %p1102_p1  ;;  %s228_s13 = sshll.u32 %s1037_s12, 4  ;;  %s229_s13 = int_to_ptr.vmem [resolvable:$true] %s228_s13 }
   0xf   : > { %s34_s14 = sadd.s32 1, %s1028_s22  ;;  %s669_s15 = sadd.s32 4294967294, %s1032_s23  }
  0x10   : > { %782 = dma.hbm_to_vmem [thread:$0]  (!%p780_p5), %s204_s28, 1024, %s206_s6, [#allocation7], %s1035_s10, %s1035_s10, %s1036_s11  }
  0x11   : > { %785 = dma.hbm_to_vmem [thread:$0]  (!%p780_p5), %s227_s9, 1024, %s229_s13, [#allocation7], %s1035_s10, %s1035_s10, %s1036_s11  }
  0x12   : > { %p36_p7 = scmp.ge.s32.totalorder %s34_s14, 2  ;;  %s41_s16 = sadd.s32 1, %s1020_s20 }
  0x13   : > { %p48_p8 = scmp.ne.s32.totalorder %s1020_s20, %s1016_s19  ;;  %p49_p9 = scmp.eq.s32.totalorder %s1032_s23, 0 }
  0x14   : > { %s1236_s14 = smov (%p36_p7, %s34_s14), 0  ;;  %p54_p10 = scmp.ne.s32.totalorder %s1016_s19, %s1012_s18 }
  0x15   : > { %s38_s17 = ssub.s32 %s1028_s22, %s1236_s14  ;;  %p177_p11 = scmp.eq.s32.totalorder %s668_s24, 1 }
  0x16   : > { %p39_p12 = scmp.eq.s32.totalorder %s38_s17, 0  ;;  %p1138_p13 = por %p1102_p1, %p54_p10 }
  0x17   : > { %p1142_p0 = por %p177_p11, %p48_p8  ;;  %p183_p2 = scmp.eq.s32.totalorder %s669_s15, 1 }
  0x18   : > { %s1147_s28 = scalar_select %p39_p12, %s1020_s20, %s41_s16  }
  0x19   : > { %p50_p4 = por %p49_p9, %p48_p8  ;;  %p1149_p5 = por %p183_p2, %p54_p10 }
  0x1a   : > { %s245_s6 = sand.u32 1, %s1020_s20   ;;  %s676_s24 = sshll.u32 %s1028_s22, 2 }
  0x1b   : > { %p796_p7 = scmp.lt.s32.totalorder %s1032_s23, 2  ;;  %s675_s7 = sshll.u32 %s245_s6, 2 }
  0x1c   : > { %s253_s10 = scalar_lea.hbm %s1219_s0, %s676_s24  ;;  %s249_s12 = scalar_lea.vmem [#allocation3], %s675_s7 }
  0x1d   : > { %s255_s11 = sshll.u32 %s253_s10, 4  ;;  %s257_s13 = sshll.u32 %s249_s12, 4  ;;  %s256_s11 = int_to_ptr.hbm [resolvable:$true] %s255_s11  ;;  %s258_s13 = int_to_ptr.vmem [resolvable:$true] %s257_s13 }
  0x1e   : > { %p787_p11 = pnand %p796_p7, %p50_p4  ;;  %s246_s15 = scalar_lea.sflag [#allocation4], %s245_s6 }
  0x1f   : > { %266 = sbr.rel (%p1110_p3) target bundleno = 386 (0x182), region = 40  ;;  %s1162_s16 = sand.u32 (!%p1110_p3), 1, %s1016_s19  }
  0x20   : > { %789 = dma.hbm_to_vmem [thread:$0]  (!%p787_p11), %s256_s11, 64, %s258_s13, %s246_s15  }
  0x21   : > { %s678_s17 = sshll.u32 (!%p1110_p3), %s1162_s16, 2  ;;  %s269_s8 = scalar_lea.sflag (!%p1110_p3), [#allocation4], %s1162_s16 }
  0x22   : > { %s272_s24 = scalar_lea.vmem (!%p1110_p3), [#allocation3], %s678_s17 }
  0x24   : > { %999 = dma.done.wait (%p1138_p13), %s269_s8, 64  }
  0x25   : > { %1001 = vsyncadd (%p1138_p13), %s269_s8, 4294967232 }
  0x26   : > { %1003 = dma.done.wait (%p1102_p1), [#allocation7], 2048  }
  0x27   : > { %1005 = vsyncadd (%p1102_p1), [#allocation7], 4294965248  ;;  %v758_v0 = vld [vmem:[#allocation6 + $0x38] sm:$0xff]  ;;  %v757_v1 = vld [vmem:[#allocation6 + $0x30] sm:$0xff]  ;;  %s748_s26 = sshll.u32 %s1024_s21, 3  ;;  %s681_s6 = sshll.u32 %s1162_s16, 3 }
  0x28   : > { %391 = vmatpush.bf16.msra.mxu0 %v758_v0  ;;  %v756_v2 = vld [vmem:[#allocation6 + $0x28] sm:$0xff]  ;;  %v755_v3 = vld [vmem:[#allocation6 + $0x20] sm:$0xff]  ;;  %v754_v4 = vld [vmem:[#allocation6 + $0x18] sm:$0xff]  ;;  %s550_s10 = scalar_lea.hbm %s1224_s5, %s748_s26  ;;  %s312_s13 = scalar_lea.vmem [#allocation9], %s681_s6 }
  0x29   : > { %v753_v5 = vld [vmem:[#allocation6 + $0x10] sm:$0xff]  ;;  %v752_v6 = vld [vmem:[#allocation6 + $0x8] sm:$0xff]  ;;  %v751_v7 = vld [vmem:[#allocation6] sm:$0xff]  ;;  %s552_s15 = sshll.u32 %s312_s13, 4  ;;  %s554_s17 = sshll.u32 %s550_s10, 4  ;;  %s553_s15 = int_to_ptr.vmem [resolvable:$true] %s552_s15  ;;  %s555_s17 = int_to_ptr.hbm [resolvable:$true] %s554_s17 }
  0x2a   : > { %v322_v8 = vld [vmem:[%s272_s24] sm:$0xf]  ;;  %v765_v10 = vld [vmem:[#allocation8 + $0x30] sm:$0xff]  ;;  %v764_v12 = vld [vmem:[#allocation8 + $0x28] sm:$0xff]  ;;  %s540_s8 = scalar_lea.sflag [#allocation5], %s1162_s16  ;;  %s960_s21 = sshra.s32 %s555_s17, 4  ;;  %s961_s21 = int_to_ptr.hbm [resolvable:$true] %s960_s21 }
  0x2b   : > { %v766_v9 = vld [vmem:[#allocation8 + $0x38] sm:$0xff]  ;;  %v763_v15 = vld [vmem:[#allocation8 + $0x20] sm:$0xff]  ;;  %v761_v22 = vld [vmem:[#allocation8 + $0x10] sm:$0xff]  ;;  %s962_s24 = scalar_lea.hbm %s961_s21, 8  ;;  %s966_s26 = scalar_lea.hbm %s1224_s5, 16 }
  0x2c   : > { %392 = vmatpush.bf16.msra.mxu0 %v757_v1  ;;  %514 = vmatpush.bf16.msra.mxu1 %v766_v9  ;;  %v852_v11 = vld [vmem:[%s1221_s2] ss:$0 sm:$0xff]  ;;  %v760_v27 = vld [vmem:[#allocation8 + $0x8] sm:$0xff]  ;;  %v759_v31 = vld [vmem:[#allocation8] sm:$0xff]  ;;  %p963_p1 = scmp.ne.s32.totalorder %s961_s21, %s962_s24  ;;  %p967_p9 = scmp.lt.s32.totalorder %s961_s21, %s1224_s5 }
  0x2d   : > { %v762_v18 = vld [vmem:[#allocation8 + $0x18] sm:$0xff]  ;;  %p968_p10 = scmp.lt.s32.totalorder %s966_s26, %s962_s24 }
  0x2e   : > { %v853_v61 = vld [vmem:[%s1223_s4] ss:$0 sm:$0xff]  ;;  %p964_p3 = pnand %p963_p1, %p1142_p0 }
  0x2f   : > { %p969_p12 = por %p968_p10, %p967_p9 }
  0x30   : > { %393 = vmatpush.bf16.msra.mxu0 %v756_v2  ;;  %515 = vmatpush.bf16.msra.mxu1 %v765_v10  ;;  %p965_p8 = pneg %p964_p3 }
  0x32   : > { %p970_p13 = pnand %p969_p12, %p965_p8 }
  0x34   : > { %394 = vmatpush.bf16.msra.mxu0 %v755_v3  ;;  %516 = vmatpush.bf16.msra.mxu1 %v764_v12 }
  0x38   : > { %395 = vmatpush.bf16.msra.mxu0 %v754_v4  ;;  %517 = vmatpush.bf16.msra.mxu1 %v763_v15 }
  0x3c   : > { %396 = vmatpush.bf16.msra.mxu0 %v753_v5  ;;  %518 = vmatpush.bf16.msra.mxu1 %v762_v18 }
  0x40   : > { %397 = vmatpush.bf16.msra.mxu0 %v752_v6  ;;  %519 = vmatpush.bf16.msra.mxu1 %v761_v22 }
  0x44   : > { %398 = vmatpush.bf16.msra.mxu0 %v751_v7  ;;  %520 = vmatpush.bf16.msra.mxu1 %v760_v27 }
  0x47   : > { %399 = vmatmul.bf16.vlgmr.msra.gmra.mxu0 %v322_v8 }
  0x48   : > { %521 = vmatpush.bf16.msra.mxu1 %v759_v31 }
  0xc4   : > { %v400_v13 = vpop.f32.mrf.mxu0 }
  0xc5   : > { %v401_v14 = vadd.f32 %v852_v11, %v400_v13 }
  0xc7   : > { %v405_v16 = vmul.f32 0.70710677, %v401_v14  ;;  %v404_v57 = vmul.f32 0.5, %v401_v14 }
  0xc9   : > { %v406_v17 = vmul.f32 %v405_v16, %v405_v16 }
  0xcb   : > { %v407_v19 = vmin.f32 %v406_v17, 16.0 }
  0xcc   : > { %v402_v20 = vpop.f32.mrf.mxu0 }
  0xcd   : > { %v408_v21 = vmul.f32 2.1237322e-06, %v407_v19  ;;  %v419_v23 = vmul.f32 3.8918573e-05, %v407_v19 }
  0xcf   : > { %v409_v24 = vadd.f32 0.00028619796, %v408_v21  ;;  %v420_v25 = vadd.f32 0.001143296, %v419_v23 }
  0xd1   : > { %v410_v26 = vmul.f32 %v409_v24, %v407_v19  ;;  %v421_v28 = vmul.f32 %v420_v25, %v407_v19 }
  0xd3   : > { %v422_v29 = vadd.f32 0.014752088, %v421_v28  ;;  %v411_v30 = vadd.f32 0.0036580483, %v410_v26 }
  0xd5   : > { %v423_v32 = vmul.f32 %v422_v29, %v407_v19  ;;  %v412_v34 = vmul.f32 %v411_v30, %v407_v19 }
  0xd7   : > { %v424_v33 = vadd.f32 0.112945676, %v423_v32  ;;  %v413_v37 = vadd.f32 0.05243302, %v412_v34 }
  0xd9   : > { %v425_v35 = vmul.f32 %v424_v33, %v407_v19  ;;  %v414_v40 = vmul.f32 %v413_v37, %v407_v19 }
  0xdb   : > { %v426_v36 = vadd.f32 0.4994258, %v425_v35  ;;  %v415_v41 = vadd.f32 0.18741608, %v414_v40 }
  0xdd   : > { %v427_v38 = vmul.f32 %v426_v36, %v407_v19  ;;  %v416_v43 = vmul.f32 %v415_v41, %v407_v19 }
  0xdf   : > { %v428_v39 = vadd.f32 1.0, %v427_v38  ;;  %v417_v47 = vadd.f32 1.1283791, %v416_v43 }
  0xe1   : > { %854 = vrcp.f32 %v428_v39  ;;  %v440_v46 = vand.u32 2147483648, %v428_v39  ;;  %v438_v49 = vand.u32 2147483647, %v428_v39  ;;  %vm434_vm1 = vweird.f32 %v428_v39 }
  0xe2   : > { %v418_v52 = vmul.f32 %v417_v47, %v405_v16 }
  0xe3   : > { %v441_v51 = vor.u32 1.1754944e-38, %v440_v46  ;;  %vm439_vm3 = vcmp.eq.f32.partialorder %v438_v49, 8.507059e+37 }
  0xe7   : > { %v855_v42 = vpop.eup %854 }
  0xe8   : > { %v430_v44 = vmul.f32 %v855_v42, %v428_v39  ;;  %vm435_vm0 = vweird.f32 %v855_v42 }
  0xe9   : > { %vm436_vm2 = vmor %vm434_vm1, %vm435_vm0 }
  0xea   : > { %v431_v45 = vsub.f32 1.0, %v430_v44 }
  0xec   : > { %v432_v48 = vmul.f32 %v855_v42, %v431_v45 }
  0xee   : > { %v433_v50 = vadd.f32 %v855_v42, %v432_v48 }
  0xf0   : > { %v437_v53 = vsel %vm436_vm2, %v855_v42, %v433_v50 }
  0xf1   : > { %v442_v54 = vsel %vm439_vm3, %v441_v51, %v437_v53 }
  0xf2   : > { %v443_v55 = vmul.f32 %v442_v54, %v418_v52 }
  0xf4   : > { %v714_v56 = vclamps-f32 %v443_v55, 1.0 }
  0xf6   : > { %v446_v58 = vadd.f32 1.0, %v714_v56 }
  0xf8   : > { %v447_v59 = vmul.f32 %v446_v58, %v404_v57 }
  0xfa   : > { %v449_v60 = vpack.c.bf16 %v447_v59, %v447_v59 }
  0xfc   : > { %522 = vmatmul.bf16.vlgmr.msra.gmra.mxu1 %v449_v60 }
 0x179   : > { %v523_v62 = vpop.f32.mrf.mxu1 }
 0x17a   : > { %v537_v63 = vadd.f32 %v853_v61, %v523_v62 }
 0x17c   : > { %538 = vst [vmem:[%s312_s13] sm:$0xff] %v537_v63 }
 0x17d   : > { %973 = shalt.err (!%p970_p13)
}
 0x17e   : > { %777 = dma.vmem_to_hbm [thread:$0]  (%p1142_p0), %s553_s15, 128, %s555_s17, %s540_s8  }
 0x181   : > { %v525_v0 = vpop.f32.mrf.mxu1 }
 0x182 PF: > { %s566_s16 = sand.u32 1, %s1012_s18   ;;  %p791_p2 = pnand %p674_p6, %p1149_p5 }
 0x183   : > { %s567_s9 = scalar_lea.sflag [#allocation5], %s566_s16 }
 0x184   : > { %p792_p4 = pneg %p791_p2 }
 0x186   : > { %1007 = dma.done.wait (%p792_p4), %s567_s9, 128  }
 0x187   : > { %1009 = vsyncadd (%p792_p4), %s567_s9, 4294967168  ;;  %s22_s23 = sadd.s32 1, %s1032_s23   ;;  %s1230_s18 = smov %s1016_s19 }
 0x188   : > { %p19_p7 = scmp.ge.s32.totalorder %s22_s23, 4   ;;  %s1231_s19 = smov %s1020_s20 }
 0x189   : > { %s1232_s20 = smov %s1147_s28  ;;  %s1233_s21 = smov %s1028_s22 }
 0x18a   : > { %s1234_s22 = smov %s1236_s14  ;;  %21 = sbr.rel (!%p19_p7) target bundleno = 7 (0x7), region = 106 }
 0x18f   :  { %573 = vsyncpa [#allocation4], 1 }
 0x190   :  { %575 = vsyncpa [#allocation4 + $0x1], 1 }
 0x191   :  { %576 = vsyncpa [#allocation7], 1 }
 0x192   :  { %577 = vsyncpa [#allocation5], 1 }
 0x193   :  { %579 = vsyncpa [#allocation5 + $0x1], 1 }

</bundles_post_ra>
